<compile_context>
chip_gen: v5e
topology: v5e:2x2
jax: 0.10.0
libtpu: 0.0.40
codegen_flags: <defaults>
</compile_context>

<pallas_src>
import jax
import jax.numpy as jnp
from jax.experimental import pallas as pl
from jax.experimental.pallas import tpu as pltpu

LANE = 128  # TPU lane width; every logical block is padded to one 128-lane block.


# ---------------------------------------------------------------------------
# Kernel
# ---------------------------------------------------------------------------
def _initial_prediction_kernel(xhc_ref, w_ref, b_ref, out_ref):
    """Fused encoder+LSTMCell+decoder.

    xhc_ref : (B, 3*LANE)   [ x | h | c ], each zero-padded to its own 128-lane block
    w_ref   : (2*LANE, 5*LANE)
                rows 0:C        , cols 0:4*LANE   -> folded input->gate weights (w_enc@w_ih)
                rows LANE:LANE+H, cols 0:4*LANE   -> hidden->gate weights (w_hh)
                rows 0:H        , cols 4*LANE:    -> decoder weights (w_dec)
              (each gate occupies its own 128-lane column block; unused entries are 0)
    b_ref   : (1, 5*LANE)   [ folded gate bias blocks | decoder bias block ]
    out_ref : (B, 3*LANE)   [ logits | h_new | c_new ], each in a 128-lane block
    """
    xh = xhc_ref[:, 0:2 * LANE].astype(jnp.float32)        # [x_pad | h_pad]
    c = xhc_ref[:, 2 * LANE:3 * LANE].astype(jnp.float32)  # c_pad (zeros beyond H)

    # Single fused gate matmul: gates = [x|h] @ [W_x ; W_hh] + b_fold
    gates = (
        jnp.dot(xh, w_ref[:, 0:4 * LANE], preferred_element_type=jnp.float32)
        + b_ref[:, 0:4 * LANE]
    )

    # Lane-aligned gate blocks (PyTorch order i, f, g, o). Padded lanes carry
    # zero gate pre-activations and zero c, so padded h_new/c_new stay exactly 0.
    i_g = jax.nn.sigmoid(gates[:, 0 * LANE:1 * LANE])
    f_g = jax.nn.sigmoid(gates[:, 1 * LANE:2 * LANE])
    g_g = jnp.tanh(gates[:, 2 * LANE:3 * LANE])
    o_g = jax.nn.sigmoid(gates[:, 3 * LANE:4 * LANE])

    c_new = f_g * c + i_g * g_g
    h_new = o_g * jnp.tanh(c_new)

    # Decoder: Linear(hidden -> num_classes), weights zero-padded to (LANE, LANE).
    out = (
        jnp.dot(h_new, w_ref[0:LANE, 4 * LANE:5 * LANE],
                preferred_element_type=jnp.float32)
        + b_ref[:, 4 * LANE:5 * LANE]
    )

    # One lane-dense output slab: three aligned, unmasked 128-lane stores.
    out_ref[:, 0 * LANE:1 * LANE] = out.astype(out_ref.dtype)
    out_ref[:, 1 * LANE:2 * LANE] = h_new.astype(out_ref.dtype)
    out_ref[:, 2 * LANE:3 * LANE] = c_new.astype(out_ref.dtype)


# ---------------------------------------------------------------------------
# Host-side packing (done once per set of weights)
# ---------------------------------------------------------------------------
def _gate_block_cols(w, hidden_size):
    """(in, 4H) -> (in, 4*LANE): each gate's H columns at the start of a 128 block."""
    parts = [
        jnp.pad(w[:, k * hidden_size:(k + 1) * hidden_size],
                ((0, 0), (0, LANE - hidden_size)))
        for k in range(4)
    ]
    return jnp.concatenate(parts, axis=1)


def pack_params(params, hidden_size, num_classes):
    """Fold encoder into the LSTM input path and pack everything into two slabs."""
    H, C = hidden_size, num_classes

    # Algebraic fold of the encoder Linear into the LSTM input weights/bias.
    w_x = params["w_enc"] @ params["w_ih"]                                   # (C, 4H)
    b_fold = params["b_enc"] @ params["w_ih"] + params["b_ih"] + params["b_hh"]  # (1, 4H)

    w_x_blk = _gate_block_cols(w_x.astype(jnp.float32), H)        # (C, 4*LANE)
    w_hh_blk = _gate_block_cols(params["w_hh"].astype(jnp.float32), H)  # (H, 4*LANE)
    b_fold_blk = _gate_block_cols(b_fold.astype(jnp.float32), H)  # (1, 4*LANE)

    w_slab = jnp.zeros((2 * LANE, 5 * LANE), jnp.float32)
    w_slab = w_slab.at[:C, 0:4 * LANE].set(w_x_blk)
    w_slab = w_slab.at[LANE:LANE + H, 0:4 * LANE].set(w_hh_blk)
    w_slab = w_slab.at[:H, 4 * LANE:4 * LANE + C].set(params["w_dec"].astype(jnp.float32))

    b_slab = jnp.zeros((1, 5 * LANE), jnp.float32)
    b_slab = b_slab.at[:, 0:4 * LANE].set(b_fold_blk)
    b_slab = b_slab.at[:, 4 * LANE:4 * LANE + C].set(params["b_dec"].astype(jnp.float32))

    return {"w_slab": w_slab, "b_slab": b_slab, "H": H, "C": C}


def _pad_lanes(a, n):
    return jnp.pad(a, ((0, 0), (0, n - a.shape[-1])))


# ---------------------------------------------------------------------------
# Wrapper
# ---------------------------------------------------------------------------
def initial_prediction(x, hidden, context, packed):
    """Fused encoder -> LSTMCell -> decoder. Returns (logits, h_new, c_new)."""
    B = x.shape[0]
    H, C = packed["H"], packed["C"]

    # Single lane-dense activation slab: [x | h | c], each in its own 128-lane block.
    xhc = jnp.concatenate(
        [_pad_lanes(x, LANE), _pad_lanes(hidden, LANE), _pad_lanes(context, LANE)],
        axis=1,
    )

    vmem = pl.BlockSpec(memory_space=pltpu.MemorySpace.VMEM)
    slab = pl.pallas_call(
        _initial_prediction_kernel,
        out_shape=jax.ShapeDtypeStruct((B, 3 * LANE), x.dtype),
        in_specs=[vmem, vmem, vmem],
        out_specs=vmem,
    )(xhc, packed["w_slab"], packed["b_slab"])

    out = slab[:, 0:C]
    h_new = slab[:, LANE:LANE + H]
    c_new = slab[:, 2 * LANE:2 * LANE + H]
    return out, h_new, c_new


# ---------------------------------------------------------------------------
# Reference + test
# ---------------------------------------------------------------------------
def make_params(key, embed_size, hidden_size, num_classes, dtype=jnp.float32):
    """Deterministic synthetic parameters (shapes match the PyTorch module, transposed)."""
    ks = jax.random.split(key, 8)
    scale = 0.1
    return {
        "w_enc": scale * jax.random.normal(ks[0], (num_classes, embed_size), dtype),
        "b_enc": scale * jax.random.normal(ks[1], (1, embed_size), dtype),
        "w_ih": scale * jax.random.normal(ks[2], (embed_size, 4 * hidden_size), dtype),
        "w_hh": scale * jax.random.normal(ks[3], (hidden_size, 4 * hidden_size), dtype),
        "b_ih": scale * jax.random.normal(ks[4], (1, 4 * hidden_size), dtype),
        "b_hh": scale * jax.random.normal(ks[5], (1, 4 * hidden_size), dtype),
        "w_dec": scale * jax.random.normal(ks[6], (hidden_size, num_classes), dtype),
        "b_dec": scale * jax.random.normal(ks[7], (1, num_classes), dtype),
    }


def reference(x, hidden, context, p):
    """Pure-JAX reference mirroring the PyTorch module (unfused)."""
    H = hidden.shape[1]
    emb = x @ p["w_enc"] + p["b_enc"]
    gates = emb @ p["w_ih"] + p["b_ih"] + hidden @ p["w_hh"] + p["b_hh"]
    i = jax.nn.sigmoid(gates[:, 0 * H:1 * H])
    f = jax.nn.sigmoid(gates[:, 1 * H:2 * H])
    g = jnp.tanh(gates[:, 2 * H:3 * H])
    o = jax.nn.sigmoid(gates[:, 3 * H:4 * H])
    c_new = f * context + i * g
    h_new = o * jnp.tanh(c_new)
    out = h_new @ p["w_dec"] + p["b_dec"]
    return out, h_new, c_new


if __name__ == "__main__":
    embed_size, hidden_size, num_classes = 26, 26, 53
    B = 2

    key = jax.random.PRNGKey(0)
    k_in, k_h, k_c, k_p = jax.random.split(key, 4)

    x = jax.random.normal(k_in, (B, num_classes), jnp.float32)
    hidden = jax.random.normal(k_h, (B, hidden_size), jnp.float32)
    context = jax.random.normal(k_c, (B, hidden_size), jnp.float32)

    params = make_params(k_p, embed_size, hidden_size, num_classes)
    packed = pack_params(params, hidden_size, num_classes)

    out, h_new, c_new = jax.block_until_ready(
        initial_prediction(x, hidden, context, packed)
    )

    ref_out, ref_h, ref_c = reference(x, hidden, context, params)
    assert jnp.allclose(out, ref_out, atol=1e-5, rtol=1e-5)
    assert jnp.allclose(h_new, ref_h, atol=1e-5, rtol=1e-5)
    assert jnp.allclose(c_new, ref_c, atol=1e-5, rtol=1e-5)

    print("KERNEL_OK")
</pallas_src>

<mosaic_0001>
module attributes {stable_mosaic.version = 11 : i64} {
  func.func @_initial_prediction_kernel(%arg0: memref<2x384xf32, #tpu.memory_space<vmem>>, %arg1: memref<256x640xf32, #tpu.memory_space<vmem>>, %arg2: memref<1x640xf32, #tpu.memory_space<vmem>>, %arg3: memref<2x384xf32, #tpu.memory_space<vmem>>) attributes {dimension_semantics = [], scalar_prefetch = 0 : i64, scratch_operands = 0 : i64, tpu.core_type = #tpu.core_type<tc>} {
    %c0 = arith.constant 0 : index
    %c0_0 = arith.constant 0 : index
    %0 = vector.load %arg0[%c0, %c0_0] : memref<2x384xf32, #tpu.memory_space<vmem>>, vector<2x256xf32>
    %c0_1 = arith.constant 0 : index
    %c256 = arith.constant 256 : index
    %1 = vector.load %arg0[%c0_1, %c256] : memref<2x384xf32, #tpu.memory_space<vmem>>, vector<2x128xf32>
    %c0_2 = arith.constant 0 : index
    %c0_3 = arith.constant 0 : index
    %2 = vector.load %arg1[%c0_2, %c0_3] : memref<256x640xf32, #tpu.memory_space<vmem>>, vector<256x512xf32>
    %cst = arith.constant dense<0.000000e+00> : vector<2x512xf32>
    %3 = tpu.matmul %0, %2, %cst {dimension_numbers = #tpu.dot_dimension_numbers<[1], [0], [0], [1], [0, 0, 1, 1], [], []>} : vector<2x256xf32>, vector<256x512xf32>, vector<2x512xf32> -> vector<2x512xf32>
    %c0_4 = arith.constant 0 : index
    %c0_5 = arith.constant 0 : index
    %4 = vector.load %arg2[%c0_4, %c0_5] : memref<1x640xf32, #tpu.memory_space<vmem>>, vector<1x512xf32>
    %5 = vector.broadcast %4 : vector<1x512xf32> to vector<2x512xf32>
    %6 = arith.addf %3, %5 : vector<2x512xf32>
    %7 = vector.extract_strided_slice %6 {offsets = [0, 0], sizes = [2, 128], strides = [1, 1]} : vector<2x512xf32> to vector<2x128xf32>
    %8 = arith.negf %7 : vector<2x128xf32>
    %9 = math.exp %8 : vector<2x128xf32>
    %cst_6 = arith.constant 1.000000e+00 : f32
    %10 = vector.broadcast %cst_6 : f32 to vector<2x128xf32>
    %11 = arith.addf %10, %9 : vector<2x128xf32>
    %12 = arith.divf %10, %11 : vector<2x128xf32>
    %13 = vector.extract_strided_slice %6 {offsets = [0, 128], sizes = [2, 128], strides = [1, 1]} : vector<2x512xf32> to vector<2x128xf32>
    %14 = arith.negf %13 : vector<2x128xf32>
    %15 = math.exp %14 : vector<2x128xf32>
    %cst_7 = arith.constant 1.000000e+00 : f32
    %16 = vector.broadcast %cst_7 : f32 to vector<2x128xf32>
    %17 = arith.addf %16, %15 : vector<2x128xf32>
    %18 = arith.divf %16, %17 : vector<2x128xf32>
    %19 = vector.extract_strided_slice %6 {offsets = [0, 256], sizes = [2, 128], strides = [1, 1]} : vector<2x512xf32> to vector<2x128xf32>
    %20 = math.tanh %19 : vector<2x128xf32>
    %21 = vector.extract_strided_slice %6 {offsets = [0, 384], sizes = [2, 128], strides = [1, 1]} : vector<2x512xf32> to vector<2x128xf32>
    %22 = arith.negf %21 : vector<2x128xf32>
    %23 = math.exp %22 : vector<2x128xf32>
    %cst_8 = arith.constant 1.000000e+00 : f32
    %24 = vector.broadcast %cst_8 : f32 to vector<2x128xf32>
    %25 = arith.addf %24, %23 : vector<2x128xf32>
    %26 = arith.divf %24, %25 : vector<2x128xf32>
    %27 = arith.mulf %18, %1 : vector<2x128xf32>
    %28 = arith.mulf %12, %20 : vector<2x128xf32>
    %29 = arith.addf %27, %28 : vector<2x128xf32>
    %30 = math.tanh %29 : vector<2x128xf32>
    %31 = arith.mulf %26, %30 : vector<2x128xf32>
    %c0_9 = arith.constant 0 : index
    %c512 = arith.constant 512 : index
    %32 = vector.load %arg1[%c0_9, %c512] : memref<256x640xf32, #tpu.memory_space<vmem>>, vector<128x128xf32>
    %cst_10 = arith.constant dense<0.000000e+00> : vector<2x128xf32>
    %33 = tpu.matmul %31, %32, %cst_10 {dimension_numbers = #tpu.dot_dimension_numbers<[1], [0], [0], [1], [0, 0, 1, 1], [], []>} : vector<2x128xf32>, vector<128x128xf32>, vector<2x128xf32> -> vector<2x128xf32>
    %c0_11 = arith.constant 0 : index
    %c512_12 = arith.constant 512 : index
    %34 = vector.load %arg2[%c0_11, %c512_12] : memref<1x640xf32, #tpu.memory_space<vmem>>, vector<1x128xf32>
    %35 = vector.broadcast %34 : vector<1x128xf32> to vector<2x128xf32>
    %36 = arith.addf %33, %35 : vector<2x128xf32>
    %c0_13 = arith.constant 0 : index
    %c0_14 = arith.constant 0 : index
    %37 = vector.load %arg3[%c0_13, %c0_14] : memref<2x384xf32, #tpu.memory_space<vmem>>, vector<2x128xf32>
    tpu.vector_store %arg3[%c0_13, %c0_14], %36 {strides = array<i32>} : memref<2x384xf32, #tpu.memory_space<vmem>>, vector<2x128xf32>,
    %c0_15 = arith.constant 0 : index
    %c128 = arith.constant 128 : index
    %38 = vector.load %arg3[%c0_15, %c128] : memref<2x384xf32, #tpu.memory_space<vmem>>, vector<2x128xf32>
    tpu.vector_store %arg3[%c0_15, %c128], %31 {strides = array<i32>} : memref<2x384xf32, #tpu.memory_space<vmem>>, vector<2x128xf32>,
    %c0_16 = arith.constant 0 : index
    %c256_17 = arith.constant 256 : index
    %39 = vector.load %arg3[%c0_16, %c256_17] : memref<2x384xf32, #tpu.memory_space<vmem>>, vector<2x128xf32>
    tpu.vector_store %arg3[%c0_16, %c256_17], %29 {strides = array<i32>} : memref<2x384xf32, #tpu.memory_space<vmem>>, vector<2x128xf32>,
    return
  }
}

</mosaic_0001>

<bundles_post_ra>
// kernel: tpu_custom_call.1
= control target key start
LH: loop header
LB: loop body
LE: loop exit
PB: predicated region body
PF: predicated region fallthrough
CT: control target
= control target key end

     0   :  { %8 = vsyncpa [#allocation3], 0  ;;  %s680_s0 = inlined_call_operand.hbm [shape: f32[2,384], index: 0, kind: input, shape index: {}]   ;;  %s681_s1 = inlined_call_operand.hbm [shape: f32[256,640], index: 1, kind: input, shape index: {}]   ;;  %s682_s2 = inlined_call_operand.hbm [shape: f32[1,640], index: 2, kind: input, shape index: {}]   ;;  %s683_s3 = inlined_call_operand.hbm [shape: f32[2,384], index: 3, kind: output, shape index: {}]  }
   0x1   :  { %9 = vsyncpa [#allocation6], 0  ;;  %s26_s14 = sshll.u32 %s681_s1, 4  ;;  %s27_s14 = int_to_ptr.hbm [resolvable:$true] %s26_s14 }
   0x2   :  { %10 = vsyncpa [#allocation4], 0  ;;  %s616_s15 = smov [#allocation5]   ;;  %s16_s19 = sshll.u32 %s680_s0, 4  ;;  %s17_s19 = int_to_ptr.hbm [resolvable:$true] %s16_s19 }
   0x3   :  { %s28_s16 = sshll.u32 %s616_s15, 4  ;;  %s617_s20 = smov 640   ;;  %s29_s16 = int_to_ptr.vmem [resolvable:$true] %s28_s16 }
   0x4   :  { %s618_s21 = smov 40   ;;  %s619_s22 = smov [#allocation2]  }
   0x5   :  { %34 = dma.hbm_to_vmem [thread:$0]  %s27_s14, 20480, %s29_s16, [#allocation6], %s617_s20, %s617_s20, %s618_s21  }
   0x6   :  { %s18_s23 = sshll.u32 %s619_s22, 4  ;;  %s40_s26 = sshll.u32 %s682_s2, 4  ;;  %s19_s23 = int_to_ptr.vmem [resolvable:$true] %s18_s23  ;;  %s41_s26 = int_to_ptr.hbm [resolvable:$true] %s40_s26 }
   0x7   :  { %21 = dma.hbm_to_vmem [thread:$0]  %s17_s19, 96, %s19_s23, [#allocation3]  }
   0x8   :  { %s620_s1 = smov [#allocation7]  }
   0x9   :  { %s42_s27 = sshll.u32 %s620_s1, 4  ;;  %s43_s27 = int_to_ptr.vmem [resolvable:$true] %s42_s27 }
   0xa   :  { %45 = dma.hbm_to_vmem [thread:$0]  %s41_s26, 80, %s43_s27, [#allocation6]  }
   0xb   :  { %610 = dma.done.wait [#allocation3], 96  }
   0xc   :  { %611 = vsyncadd [#allocation3], 4294967200 }
   0xd   :  { %612 = dma.done.wait [#allocation6], 20560  }
   0xe   :  { %613 = vsyncadd [#allocation6], 4294946736  ;;  %v121_v0 = vld [vmem:[#allocation5 + $0x260] sm:$0xff]  ;;  %v117_v1 = vld [vmem:[#allocation5 + $0x238] sm:$0xff]  ;;  %s621_s0 = smov [#allocation8]   ;;  %s477_s30 = sshll.u32 %s683_s3, 4  ;;  %s478_s30 = int_to_ptr.hbm [resolvable:$true] %s477_s30 }
   0xf   :  { %v185_v2 = vld [vmem:[#allocation5 + $0x4e0] sm:$0xff]  ;;  %244 = vmatpush.msra.mxu2 %v121_v0  ;;  %v120_v3 = vld [vmem:[#allocation5 + $0x258] sm:$0xff]  ;;  %v113_v5 = vld [vmem:[#allocation5 + $0x210] sm:$0xff]  ;;  %s475_s2 = sshll.u32 %s621_s0, 4  ;;  %s476_s2 = int_to_ptr.vmem [resolvable:$true] %s475_s2 }
  0x10   :  { %264 = vmatpush.msra.mxu3 %v185_v2  ;;  %v181_v4 = vld [vmem:[#allocation5 + $0x4b8] sm:$0xff]  ;;  %204 = vmatpush.msra.mxu0 %v120_v3  ;;  %v116_v6 = vld [vmem:[#allocation5 + $0x230] sm:$0xff]  ;;  %v112_v9 = vld [vmem:[#allocation5 + $0x208] sm:$0xff] }
  0x11   :  { %v184_v7 = vld [vmem:[#allocation5 + $0x4d8] sm:$0xff]  ;;  %245 = vmatpush.msra.mxu2 %v117_v1  ;;  %v177_v8 = vld [vmem:[#allocation5 + $0x490] sm:$0xff]  ;;  %v109_v11 = vld [vmem:[#allocation5 + $0x1e8] sm:$0xff] }
  0x12   :  { %265 = vmatpush.msra.mxu3 %v181_v4  ;;  %v180_v10 = vld [vmem:[#allocation5 + $0x4b0] sm:$0xff]  ;;  %205 = vmatpush.msra.mxu0 %v116_v6  ;;  %v173_v12 = vld [vmem:[#allocation5 + $0x468] sm:$0xff]  ;;  %v108_v13 = vld [vmem:[#allocation5 + $0x1e0] sm:$0xff] }
  0x13   :  { %224 = vmatpush.msra.mxu1 %v184_v7  ;;  %246 = vmatpush.msra.mxu2 %v113_v5  ;;  %v176_v14 = vld [vmem:[#allocation5 + $0x488] sm:$0xff]  ;;  %v105_v15 = vld [vmem:[#allocation5 + $0x1c0] sm:$0xff]  ;;  %v104_v17 = vld [vmem:[#allocation5 + $0x1b8] sm:$0xff] }
  0x14   :  { %266 = vmatpush.msra.mxu3 %v177_v8  ;;  %206 = vmatpush.msra.mxu0 %v112_v9  ;;  %v169_v16 = vld [vmem:[#allocation5 + $0x440] sm:$0xff]  ;;  %v101_v19 = vld [vmem:[#allocation5 + $0x198] sm:$0xff]  ;;  %v100_v21 = vld [vmem:[#allocation5 + $0x190] sm:$0xff] }
  0x15   :  { %225 = vmatpush.msra.mxu1 %v180_v10  ;;  %247 = vmatpush.msra.mxu2 %v109_v11  ;;  %v172_v18 = vld [vmem:[#allocation5 + $0x460] sm:$0xff]  ;;  %v165_v20 = vld [vmem:[#allocation5 + $0x418] sm:$0xff]  ;;  %v97_v23 = vld [vmem:[#allocation5 + $0x170] sm:$0xff] }
  0x16   :  { %267 = vmatpush.msra.mxu3 %v173_v12  ;;  %207 = vmatpush.msra.mxu0 %v108_v13  ;;  %v168_v22 = vld [vmem:[#allocation5 + $0x438] sm:$0xff]  ;;  %v161_v24 = vld [vmem:[#allocation5 + $0x3f0] sm:$0xff]  ;;  %v96_v25 = vld [vmem:[#allocation5 + $0x168] sm:$0xff] }
  0x17   :  { %226 = vmatpush.msra.mxu1 %v176_v14  ;;  %248 = vmatpush.msra.mxu2 %v105_v15  ;;  %v164_v26 = vld [vmem:[#allocation5 + $0x410] sm:$0xff]  ;;  %v93_v27 = vld [vmem:[#allocation5 + $0x148] sm:$0xff]  ;;  %v92_v29 = vld [vmem:[#allocation5 + $0x140] sm:$0xff] }
  0x18   :  { %268 = vmatpush.msra.mxu3 %v169_v16  ;;  %208 = vmatpush.msra.mxu0 %v104_v17  ;;  %v157_v28 = vld [vmem:[#allocation5 + $0x3c8] sm:$0xff]  ;;  %v89_v31 = vld [vmem:[#allocation5 + $0x120] sm:$0xff]  ;;  %v88_v33 = vld [vmem:[#allocation5 + $0x118] sm:$0xff] }
  0x19   :  { %227 = vmatpush.msra.mxu1 %v172_v18  ;;  %249 = vmatpush.msra.mxu2 %v101_v19  ;;  %v160_v30 = vld [vmem:[#allocation5 + $0x3e8] sm:$0xff]  ;;  %v153_v32 = vld [vmem:[#allocation5 + $0x3a0] sm:$0xff]  ;;  %v85_v35 = vld [vmem:[#allocation5 + $0xf8] sm:$0xff] }
  0x1a   :  { %269 = vmatpush.msra.mxu3 %v165_v20  ;;  %209 = vmatpush.msra.mxu0 %v100_v21  ;;  %v156_v34 = vld [vmem:[#allocation5 + $0x3c0] sm:$0xff]  ;;  %v149_v36 = vld [vmem:[#allocation5 + $0x378] sm:$0xff]  ;;  %v84_v37 = vld [vmem:[#allocation5 + $0xf0] sm:$0xff] }
  0x1b   :  { %228 = vmatpush.msra.mxu1 %v168_v22  ;;  %250 = vmatpush.msra.mxu2 %v97_v23  ;;  %v152_v38 = vld [vmem:[#allocation5 + $0x398] sm:$0xff]  ;;  %v81_v39 = vld [vmem:[#allocation5 + $0xd0] sm:$0xff]  ;;  %v80_v41 = vld [vmem:[#allocation5 + $0xc8] sm:$0xff] }
  0x1c   :  { %270 = vmatpush.msra.mxu3 %v161_v24  ;;  %210 = vmatpush.msra.mxu0 %v96_v25  ;;  %v145_v40 = vld [vmem:[#allocation5 + $0x350] sm:$0xff]  ;;  %v77_v43 = vld [vmem:[#allocation5 + $0xa8] sm:$0xff]  ;;  %v76_v45 = vld [vmem:[#allocation5 + $0xa0] sm:$0xff] }
  0x1d   :  { %229 = vmatpush.msra.mxu1 %v164_v26  ;;  %251 = vmatpush.msra.mxu2 %v93_v27  ;;  %v148_v42 = vld [vmem:[#allocation5 + $0x370] sm:$0xff]  ;;  %v141_v44 = vld [vmem:[#allocation5 + $0x328] sm:$0xff]  ;;  %v73_v47 = vld [vmem:[#allocation5 + $0x80] sm:$0xff] }
  0x1e   :  { %271 = vmatpush.msra.mxu3 %v157_v28  ;;  %211 = vmatpush.msra.mxu0 %v92_v29  ;;  %v144_v46 = vld [vmem:[#allocation5 + $0x348] sm:$0xff]  ;;  %v137_v48 = vld [vmem:[#allocation5 + $0x300] sm:$0xff]  ;;  %v72_v49 = vld [vmem:[#allocation5 + $0x78] sm:$0xff] }
  0x1f   :  { %230 = vmatpush.msra.mxu1 %v160_v30  ;;  %252 = vmatpush.msra.mxu2 %v89_v31  ;;  %v140_v50 = vld [vmem:[#allocation5 + $0x320] sm:$0xff]  ;;  %v69_v51 = vld [vmem:[#allocation5 + $0x58] sm:$0xff]  ;;  %v68_v54 = vld [vmem:[#allocation5 + $0x50] sm:$0xff] }
  0x20   :  { %272 = vmatpush.msra.mxu3 %v153_v32  ;;  %212 = vmatpush.msra.mxu0 %v88_v33  ;;  %v133_v52 = vld [vmem:[#allocation5 + $0x2d8] sm:$0xff]  ;;  %v65_v56 = vld [vmem:[#allocation5 + $0x30] sm:$0xff]  ;;  %v64_v58 = vld [vmem:[#allocation5 + $0x28] sm:$0xff] }
  0x21   :  { %231 = vmatpush.msra.mxu1 %v156_v34  ;;  %253 = vmatpush.msra.mxu2 %v85_v35  ;;  %v58_v53 = vld [vmem:[#allocation2] sm:$0xf]  ;;  %v129_v57 = vld [vmem:[#allocation5 + $0x2b0] sm:$0xff]  ;;  %v61_v60 = vld [vmem:[#allocation5 + $0x8] sm:$0xff] }
  0x22   :  { %273 = vmatpush.msra.mxu3 %v149_v36  ;;  %213 = vmatpush.msra.mxu0 %v84_v37  ;;  %v136_v55 = vld [vmem:[#allocation5 + $0x2f8] sm:$0xff]  ;;  %199 = vst [vmem:[#allocation1] ss:$4 sm:$0xff] %v58_v53  ;;  %v132_v59 = vld [vmem:[#allocation5 + $0x2d0] sm:$0xff]  ;;  %v125_v61 = vld [vmem:[#allocation5 + $0x288] sm:$0xff] }
  0x23   :  { %232 = vmatpush.msra.mxu1 %v152_v38  ;;  %254 = vmatpush.msra.mxu2 %v81_v39  ;;  %v123_v62 = vld [vmem:[#allocation5 + $0x270] sm:$0xff]  ;;  %v60_v63 = vld [vmem:[#allocation5] sm:$0xff]  ;;  %v128_v0 = vld [vmem:[#allocation5 + $0x2a8] sm:$0xff] }
  0x24   :  { %274 = vmatpush.msra.mxu3 %v145_v40  ;;  %214 = vmatpush.msra.mxu0 %v80_v41  ;;  %v187_v1 = vld [vmem:[#allocation5 + $0x4f0] sm:$0xff]  ;;  %v119_v2 = vld [vmem:[#allocation5 + $0x248] sm:$0xff]  ;;  %v124_v4 = vld [vmem:[#allocation5 + $0x280] sm:$0xff] }
  0x25   :  { %233 = vmatpush.msra.mxu1 %v148_v42  ;;  %255 = vmatpush.msra.mxu2 %v77_v43  ;;  %v122_v3 = vld [vmem:[#allocation5 + $0x268] sm:$0xff]  ;;  %v115_v6 = vld [vmem:[#allocation5 + $0x220] sm:$0xff]  ;;  %v111_v10 = vld [vmem:[#allocation5 + $0x1f8] sm:$0xff] }
  0x26   :  { %275 = vmatpush.msra.mxu3 %v141_v44  ;;  %215 = vmatpush.msra.mxu0 %v76_v45  ;;  %v183_v5 = vld [vmem:[#allocation5 + $0x4c8] sm:$0xff]  ;;  %v118_v7 = vld [vmem:[#allocation5 + $0x240] sm:$0xff]  ;;  %v114_v11 = vld [vmem:[#allocation5 + $0x218] sm:$0xff] }
  0x27   :  { %234 = vmatpush.msra.mxu1 %v144_v46  ;;  %256 = vmatpush.msra.mxu2 %v73_v47  ;;  %v186_v8 = vld [vmem:[#allocation5 + $0x4e8] sm:$0xff]  ;;  %v179_v9 = vld [vmem:[#allocation5 + $0x4a0] sm:$0xff]  ;;  %v107_v14 = vld [vmem:[#allocation5 + $0x1d0] sm:$0xff] }
  0x28   :  { %276 = vmatpush.msra.mxu3 %v137_v48  ;;  %216 = vmatpush.msra.mxu0 %v72_v49  ;;  %v182_v13 = vld [vmem:[#allocation5 + $0x4c0] sm:$0xff]  ;;  %v175_v15 = vld [vmem:[#allocation5 + $0x478] sm:$0xff]  ;;  %v110_v17 = vld [vmem:[#allocation5 + $0x1f0] sm:$0xff] }
  0x29   :  { %235 = vmatpush.msra.mxu1 %v140_v50  ;;  %257 = vmatpush.msra.mxu2 %v69_v51  ;;  %v651_v12 = vld.sshfl [vmem:[#allocation1] sm:$0xff pattern:$0x73625140]  ;;  %v653_v16 = vld.sshfl [vmem:[#allocation1 + $0x8] sm:$0xff pattern:$0x73625140] }
  0x2a   :  { %277 = vmatpush.msra.mxu3 %v133_v52  ;;  %217 = vmatpush.msra.mxu0 %v68_v54  ;;  %v178_v18 = vld [vmem:[#allocation5 + $0x498] sm:$0xff]  ;;  %v103_v19 = vld [vmem:[#allocation5 + $0x1a8] sm:$0xff]  ;;  %v171_v20 = vld [vmem:[#allocation5 + $0x450] sm:$0xff] }
  0x2b   :  { %236 = vmatpush.msra.mxu1 %v136_v55  ;;  %258 = vmatpush.msra.mxu2 %v65_v56  ;;  %v106_v21 = vld [vmem:[#allocation5 + $0x1c8] sm:$0xff]  ;;  %v174_v22 = vld [vmem:[#allocation5 + $0x470] sm:$0xff]  ;;  %v99_v23 = vld [vmem:[#allocation5 + $0x180] sm:$0xff] }
  0x2c   :  { %278 = vmatpush.msra.mxu3 %v129_v57  ;;  %218 = vmatpush.msra.mxu0 %v64_v58  ;;  %v167_v24 = vld [vmem:[#allocation5 + $0x428] sm:$0xff]  ;;  %v102_v25 = vld [vmem:[#allocation5 + $0x1a0] sm:$0xff]  ;;  %v95_v27 = vld [vmem:[#allocation5 + $0x158] sm:$0xff] }
  0x2d   :  { %237 = vmatpush.msra.mxu1 %v132_v59  ;;  %259 = vmatpush.msra.mxu2 %v61_v60  ;;  %v170_v26 = vld [vmem:[#allocation5 + $0x448] sm:$0xff]  ;;  %v163_v28 = vld [vmem:[#allocation5 + $0x400] sm:$0xff]  ;;  %v98_v29 = vld [vmem:[#allocation5 + $0x178] sm:$0xff] }
  0x2e   :  { %279 = vmatpush.msra.mxu3 %v125_v61  ;;  %219 = vmatpush.msra.mxu0 %v60_v63  ;;  %v166_v30 = vld [vmem:[#allocation5 + $0x420] sm:$0xff]  ;;  %v91_v31 = vld [vmem:[#allocation5 + $0x130] sm:$0xff]  ;;  %v159_v32 = vld [vmem:[#allocation5 + $0x3d8] sm:$0xff] }
  0x2f   :  { %324 = vmatpush.msrb.mxu2 %v123_v62  ;;  %238 = vmatpush.msra.mxu1 %v128_v0  ;;  %v94_v33 = vld [vmem:[#allocation5 + $0x150] sm:$0xff]  ;;  %v162_v34 = vld [vmem:[#allocation5 + $0x3f8] sm:$0xff]  ;;  %v87_v35 = vld [vmem:[#allocation5 + $0x108] sm:$0xff] }
  0x30   :  { %344 = vmatpush.msrb.mxu3 %v187_v1  ;;  %284 = vmatpush.msrb.mxu0 %v122_v3  ;;  %v155_v36 = vld [vmem:[#allocation5 + $0x3b0] sm:$0xff]  ;;  %v90_v37 = vld [vmem:[#allocation5 + $0x128] sm:$0xff]  ;;  %v83_v39 = vld [vmem:[#allocation5 + $0xe0] sm:$0xff] }
  0x31   :  { %325 = vmatpush.msrb.mxu2 %v119_v2  ;;  %239 = vmatpush.msra.mxu1 %v124_v4  ;;  %v158_v38 = vld [vmem:[#allocation5 + $0x3d0] sm:$0xff]  ;;  %v151_v40 = vld [vmem:[#allocation5 + $0x388] sm:$0xff]  ;;  %v86_v41 = vld [vmem:[#allocation5 + $0x100] sm:$0xff] }
  0x32   :  { %345 = vmatpush.msrb.mxu3 %v183_v5  ;;  %285 = vmatpush.msrb.mxu0 %v118_v7  ;;  %v154_v42 = vld [vmem:[#allocation5 + $0x3a8] sm:$0xff]  ;;  %v79_v43 = vld [vmem:[#allocation5 + $0xb8] sm:$0xff]  ;;  %v147_v44 = vld [vmem:[#allocation5 + $0x360] sm:$0xff] }
  0x33   :  { %326 = vmatpush.msrb.mxu2 %v115_v6  ;;  %304 = vmatpush.msrb.mxu1 %v186_v8  ;;  %v82_v45 = vld [vmem:[#allocation5 + $0xd8] sm:$0xff]  ;;  %v150_v46 = vld [vmem:[#allocation5 + $0x380] sm:$0xff]  ;;  %v75_v47 = vld [vmem:[#allocation5 + $0x90] sm:$0xff] }
  0x34   :  { %346 = vmatpush.msrb.mxu3 %v179_v9  ;;  %286 = vmatpush.msrb.mxu0 %v114_v11  ;;  %v143_v48 = vld [vmem:[#allocation5 + $0x338] sm:$0xff]  ;;  %v78_v49 = vld [vmem:[#allocation5 + $0xb0] sm:$0xff]  ;;  %v71_v51 = vld [vmem:[#allocation5 + $0x68] sm:$0xff] }
  0x35   :  { %327 = vmatpush.msrb.mxu2 %v111_v10  ;;  %305 = vmatpush.msrb.mxu1 %v182_v13  ;;  %v146_v50 = vld [vmem:[#allocation5 + $0x358] sm:$0xff]  ;;  %v139_v52 = vld [vmem:[#allocation5 + $0x310] sm:$0xff]  ;;  %v74_v53 = vld [vmem:[#allocation5 + $0x88] sm:$0xff] }
  0x36   :  { %260 = vmatmul.f32.vlgmr.msra.gmra.mxu2 %v651_v12  ;;  %347 = vmatpush.msrb.mxu3 %v175_v15  ;;  %v142_v54 = vld [vmem:[#allocation5 + $0x330] sm:$0xff]  ;;  %v67_v55 = vld [vmem:[#allocation5 + $0x40] sm:$0xff]  ;;  %v135_v56 = vld [vmem:[#allocation5 + $0x2e8] sm:$0xff] }
  0x37   :  { %328 = vmatpush.msrb.mxu2 %v107_v14  ;;  %280 = vmatmul.f32.vlgmr.msra.gmra.mxu3 %v653_v16  ;;  %v70_v57 = vld [vmem:[#allocation5 + $0x60] sm:$0xff]  ;;  %v138_v58 = vld [vmem:[#allocation5 + $0x308] sm:$0xff]  ;;  %v63_v59 = vld [vmem:[#allocation5 + $0x18] sm:$0xff] }
  0x38   :  { %287 = vmatpush.msrb.mxu0 %v110_v17  ;;  %306 = vmatpush.msrb.mxu1 %v178_v18  ;;  %v131_v60 = vld [vmem:[#allocation5 + $0x2c0] sm:$0xff]  ;;  %v66_v61 = vld [vmem:[#allocation5 + $0x38] sm:$0xff]  ;;  %v62_v0 = vld [vmem:[#allocation5 + $0x10] sm:$0xff] }
  0x39   :  { %329 = vmatpush.msrb.mxu2 %v103_v19  ;;  %348 = vmatpush.msrb.mxu3 %v171_v20  ;;  %v134_v62 = vld [vmem:[#allocation5 + $0x2e0] sm:$0xff]  ;;  %v127_v63 = vld [vmem:[#allocation5 + $0x298] sm:$0xff]  ;;  %v126_v2 = vld [vmem:[#allocation5 + $0x290] sm:$0xff] }
  0x3a   :  { %288 = vmatpush.msrb.mxu0 %v106_v21  ;;  %307 = vmatpush.msrb.mxu1 %v174_v22  ;;  %v130_v1 = vld [vmem:[#allocation5 + $0x2b8] sm:$0xff]  ;;  %v663_v3 = vld [vmem:[#allocation7] sm:$0xf]  ;;  %v441_v7 = vld [vmem:[#allocation5 + $0x250] sm:$0xff] }
  0x3b   :  { %330 = vmatpush.msrb.mxu2 %v99_v23  ;;  %349 = vmatpush.msrb.mxu3 %v167_v24  ;;  %v190_v4 = vperm.slane %v663_v3, 0  ;;  %v191_v5 = vperm.slane %v663_v3, 1  ;;  %v442_v6 = vld [vmem:[#allocation5 + $0x278] sm:$0xff]  ;;  %v440_v13 = vld [vmem:[#allocation5 + $0x228] sm:$0xff]  ;;  %v437_v21 = vld [vmem:[#allocation5 + $0x1b0] sm:$0xff] }
  0x3c   :  { %220 = vmatmul.f32.vlgmr.msra.gmra.mxu0 %v651_v12  ;;  %308 = vmatpush.msrb.mxu1 %v170_v26  ;;  %v438_v19 = vld [vmem:[#allocation5 + $0x1d8] sm:$0xff]  ;;  %v436_v22 = vld [vmem:[#allocation5 + $0x188] sm:$0xff]  ;;  %v435_v23 = vld [vmem:[#allocation5 + $0x160] sm:$0xff] }
  0x3d   :  { %289 = vmatpush.msrb.mxu0 %v102_v25  ;;  %331 = vmatpush.msrb.mxu2 %v95_v27  ;;  %v434_v25 = vld [vmem:[#allocation5 + $0x138] sm:$0xff] }
  0x3e   :  { %350 = vmatpush.msrb.mxu3 %v163_v28  ;;  %240 = vmatmul.f32.vlgmr.msra.gmra.mxu1 %v653_v16 }
  0x3f   :  { %290 = vmatpush.msrb.mxu0 %v98_v29  ;;  %309 = vmatpush.msrb.mxu1 %v166_v30  ;;  %v433_v29 = vld [vmem:[#allocation5 + $0x110] sm:$0xff]  ;;  %v432_v30 = vld [vmem:[#allocation5 + $0xe8] sm:$0xff] }
  0x40   :  { %332 = vmatpush.msrb.mxu2 %v91_v31  ;;  %351 = vmatpush.msrb.mxu3 %v159_v32  ;;  %v431_v31 = vld [vmem:[#allocation5 + $0xc0] sm:$0xff]  ;;  %v430_v32 = vld [vmem:[#allocation5 + $0x98] sm:$0xff] }
  0x41   :  { %291 = vmatpush.msrb.mxu0 %v94_v33  ;;  %310 = vmatpush.msrb.mxu1 %v162_v34  ;;  %v192_v33 = vperm.slane %v663_v3, 2  ;;  %v429_v34 = vld [vmem:[#allocation5 + $0x70] sm:$0xff] }
  0x42   :  { %333 = vmatpush.msrb.mxu2 %v87_v35  ;;  %352 = vmatpush.msrb.mxu3 %v155_v36 }
  0x43   :  { %292 = vmatpush.msrb.mxu0 %v90_v37  ;;  %311 = vmatpush.msrb.mxu1 %v158_v38 }
  0x44   :  { %334 = vmatpush.msrb.mxu2 %v83_v39  ;;  %353 = vmatpush.msrb.mxu3 %v151_v40  ;;  %v193_v39 = vperm.slane %v663_v3, 3  ;;  %v428_v40 = vld [vmem:[#allocation5 + $0x48] sm:$0xff] }
  0x45   :  { %293 = vmatpush.msrb.mxu0 %v86_v41  ;;  %312 = vmatpush.msrb.mxu1 %v154_v42 }
  0x46   :  { %335 = vmatpush.msrb.mxu2 %v79_v43  ;;  %354 = vmatpush.msrb.mxu3 %v147_v44 }
  0x47   :  { %294 = vmatpush.msrb.mxu0 %v82_v45  ;;  %313 = vmatpush.msrb.mxu1 %v150_v46 }
  0x48   :  { %336 = vmatpush.msrb.mxu2 %v75_v47  ;;  %355 = vmatpush.msrb.mxu3 %v143_v48  ;;  %v427_v48 = vld [vmem:[#allocation5 + $0x20] sm:$0xff] }
  0x49   :  { %295 = vmatpush.msrb.mxu0 %v78_v49  ;;  %314 = vmatpush.msrb.mxu1 %v146_v50 }
  0x4a   :  { %337 = vmatpush.msrb.mxu2 %v71_v51  ;;  %356 = vmatpush.msrb.mxu3 %v139_v52 }
  0x4b   :  { %296 = vmatpush.msrb.mxu0 %v74_v53  ;;  %315 = vmatpush.msrb.mxu1 %v142_v54 }
  0x4c   :  { %338 = vmatpush.msrb.mxu2 %v67_v55  ;;  %357 = vmatpush.msrb.mxu3 %v135_v56 }
  0x4d   :  { %297 = vmatpush.msrb.mxu0 %v70_v57  ;;  %316 = vmatpush.msrb.mxu1 %v138_v58 }
  0x4e   :  { %339 = vmatpush.msrb.mxu2 %v63_v59  ;;  %358 = vmatpush.msrb.mxu3 %v131_v60 }
  0x4f   :  { %298 = vmatpush.msrb.mxu0 %v66_v61  ;;  %317 = vmatpush.msrb.mxu1 %v134_v62  ;;  %v59_v62 = vld [vmem:[#allocation2 + $0x4] sm:$0x3] }
  0x50   :  { %340 = vmatmul.f32.vlgmr.msrb.gmra.mxu2 %v651_v12  ;;  %359 = vmatpush.msrb.mxu3 %v127_v63 }
  0x51   :  { %299 = vmatpush.msrb.mxu0 %v62_v0  ;;  %318 = vmatpush.msrb.mxu1 %v130_v1 }
  0x52   :  { %360 = vmatmul.f32.vlgmr.msrb.gmra.mxu3 %v653_v16  ;;  %300 = vmatmul.f32.vlgmr.msrb.gmra.mxu0 %v651_v12 }
  0x53   :  { %319 = vmatpush.msrb.mxu1 %v126_v2  ;;  %447 = vmatpush.msra.mxu0 %v442_v6 }
  0x54   :  { %320 = vmatmul.f32.vlgmr.msrb.gmra.mxu1 %v653_v16  ;;  %v439_v16 = vld [vmem:[#allocation5 + $0x200] sm:$0xff] }
  0x55   :  { %448 = vmatpush.msra.mxu0 %v441_v7 }
  0x57   :  { %449 = vmatpush.msra.mxu0 %v440_v13 }
  0x59   :  { %450 = vmatpush.msra.mxu0 %v439_v16 }
  0x5b   :  { %451 = vmatpush.msra.mxu0 %v438_v19 }
  0x5d   :  { %452 = vmatpush.msra.mxu0 %v437_v21 }
  0x5f   :  { %453 = vmatpush.msra.mxu0 %v436_v22 }
  0x61   :  { %454 = vmatpush.msra.mxu0 %v435_v23  ;;  %v497_v23 = vld [vmem:[#allocation7 + $0x4] ss:$0 sm:$0xff] }
  0x63   :  { %455 = vmatpush.msra.mxu0 %v434_v25 }
  0x65   :  { %456 = vmatpush.msra.mxu0 %v433_v29 }
  0x67   :  { %457 = vmatpush.msra.mxu0 %v432_v30 }
  0x69   :  { %458 = vmatpush.msra.mxu0 %v431_v31 }
  0x6b   :  { %459 = vmatpush.msra.mxu0 %v430_v32 }
  0x6d   :  { %460 = vmatpush.msra.mxu0 %v429_v34 }
  0x6f   :  { %461 = vmatpush.msra.mxu0 %v428_v40 }
  0x71   :  { %462 = vmatpush.msra.mxu0 %v427_v48 }
  0xb9   :  { %v221_v8 = vpop.f32.mrf.mxu0  ;;  %v261_v9 = vpop.f32.mrf.mxu2 }
  0xba   :  { %v222_v10 = vadd.f32 %v221_v8, %v190_v4  ;;  %v262_v11 = vadd.f32 %v261_v9, %v191_v5  ;;  %v281_v14 = vpop.f32.mrf.mxu3 }
  0xbb   :  { %v241_v12 = vpop.f32.mrf.mxu1 }
  0xbc   :  { %v282_v15 = vadd.f32 %v281_v14, %v262_v11  ;;  %v242_v17 = vadd.f32 %v241_v12, %v222_v10 }
  0xbe   :  { %v489_v18 = vmul.f32 -1.442695, %v282_v15  ;;  %v488_v20 = vmul.f32 -1.442695, %v242_v17 }
  0xc0   :  { %498 = vpow2.f32 %v489_v18 }
  0xc1   :  { %500 = vpow2.f32 %v488_v20 }
  0xc6   :  { %v499_v24 = vpop.eup %498 }
  0xc7   :  { %v501_v26 = vpop.eup %500  ;;  %v386_v27 = vadd.f32 1.0, %v499_v24 }
  0xc8   :  { %v367_v28 = vadd.f32 1.0, %v501_v26 }
  0xc9   :  { %502 = vrcp.f32 %v386_v27  ;;  %vm392_vm0 = vweird.f32 %v386_v27  ;;  %v398_v42 = vand.u32 2147483648, %v386_v27  ;;  %v396_v44 = vand.u32 2147483647, %v386_v27 }
  0xca   :  { %504 = vrcp.f32 %v367_v28  ;;  %vm373_vm2 = vweird.f32 %v367_v28  ;;  %v379_v47 = vand.u32 2147483648, %v367_v28  ;;  %v377_v51 = vand.u32 2147483647, %v367_v28 }
  0xcb   :  { %v399_v56 = vor.u32 1.1754944e-38, %v398_v42  ;;  %vm397_vm6 = vcmp.eq.f32.partialorder %v396_v44, 8.507059e+37 }
  0xcc   :  { %v380_v59 = vor.u32 1.1754944e-38, %v379_v47  ;;  %vm378_vm7 = vcmp.eq.f32.partialorder %v377_v51, 8.507059e+37 }
  0xcf   :  { %v503_v35 = vpop.eup %502  ;;  %v301_v38 = vpop.f32.mrf.mxu0 }
  0xd0   :  { %v505_v36 = vpop.eup %504  ;;  %v388_v37 = vmul.f32 %v503_v35, %v386_v27  ;;  %v302_v43 = vadd.f32 %v301_v38, %v192_v33  ;;  %vm393_vm1 = vweird.f32 %v503_v35 }
  0xd1   :  { %v369_v41 = vmul.f32 %v505_v36, %v367_v28  ;;  %v321_v46 = vpop.f32.mrf.mxu1  ;;  %vm374_vm3 = vweird.f32 %v505_v36  ;;  %vm670_vm4 = vmor %vm392_vm0, %vm393_vm1 }
  0xd2   :  { %v389_v45 = vsub.f32 1.0, %v388_v37  ;;  %v322_v50 = vadd.f32 %v321_v46, %v302_v43  ;;  %vm375_vm5 = vmor %vm373_vm2, %vm374_vm3 }
  0xd3   :  { %v370_v49 = vsub.f32 1.0, %v369_v41  ;;  %v341_v52 = vpop.f32.mrf.mxu2 }
  0xd4   :  { %v390_v53 = vmul.f32 %v503_v35, %v389_v45  ;;  %v342_v54 = vadd.f32 %v341_v52, %v193_v39  ;;  %506 = vtanh.f32 %v322_v50 }
  0xd5   :  { %v371_v57 = vmul.f32 %v505_v36, %v370_v49  ;;  %v361_v58 = vpop.f32.mrf.mxu3 }
  0xd6   :  { %v391_v60 = vadd.f32 %v503_v35, %v390_v53  ;;  %v362_v61 = vadd.f32 %v361_v58, %v342_v54 }
  0xd7   :  { %v372_v63 = vadd.f32 %v505_v36, %v371_v57 }
  0xd8   :  { %v395_v0 = vsel %vm670_vm4, %v503_v35, %v391_v60  ;;  %v490_v1 = vmul.f32 -1.442695, %v362_v61 }
  0xd9   :  { %v376_v2 = vsel %vm375_vm5, %v505_v36, %v372_v63  ;;  %v400_v3 = vsel %vm397_vm6, %v399_v56, %v395_v0 }
  0xda   :  { %v381_v4 = vsel %vm378_vm7, %v380_v59, %v376_v2  ;;  %v422_v5 = vmul.f32 %v400_v3, %v59_v62  ;;  %508 = vpow2.f32 %v490_v1  ;;  %v507_v6 = vpop.eup %506 }
  0xdb   :  { %v423_v7 = vmul.f32 %v507_v6, %v381_v4 }
  0xdd   :  { %v424_v8 = vadd.f32 %v423_v7, %v422_v5 }
  0xdf   :  { %469 = vst [vmem:[#allocation8 + $0x4] sm:$0x3] %v424_v8 }
  0xe0   :  { %v509_v9 = vpop.eup %508 }
  0xe1   :  { %v406_v10 = vadd.f32 1.0, %v509_v9 }
  0xe3   :  { %510 = vrcp.f32 %v406_v10  ;;  %v418_v12 = vand.u32 2147483648, %v406_v10  ;;  %v416_v16 = vand.u32 2147483647, %v406_v10  ;;  %vm412_vm9 = vweird.f32 %v406_v10 }
  0xe4   :  { %512 = vtanh.f32 %v424_v8 }
  0xe5   :  { %v419_v18 = vor.u32 1.1754944e-38, %v418_v12  ;;  %vm417_vm11 = vcmp.eq.f32.partialorder %v416_v16, 8.507059e+37 }
  0xe9   :  { %v511_v11 = vpop.eup %510 }
  0xea   :  { %v408_v13 = vmul.f32 %v511_v11, %v406_v10  ;;  %vm413_vm8 = vweird.f32 %v511_v11  ;;  %v513_v20 = vpop.eup %512 }
  0xeb   :  { %vm414_vm10 = vmor %vm412_vm9, %vm413_vm8 }
  0xec   :  { %v409_v14 = vsub.f32 1.0, %v408_v13 }
  0xee   :  { %v410_v15 = vmul.f32 %v511_v11, %v409_v14 }
  0xf0   :  { %v411_v17 = vadd.f32 %v511_v11, %v410_v15 }
  0xf2   :  { %v415_v19 = vsel %vm414_vm10, %v511_v11, %v411_v17 }
  0xf3   :  { %v420_v21 = vsel %vm417_vm11, %v419_v18, %v415_v19 }
  0xf4   :  { %v426_v22 = vmul.f32 %v513_v20, %v420_v21 }
  0xf6   :  { %463 = vmatmul.f32.vlgmr.msra.gmra.mxu0 %v426_v22  ;;  %468 = vst [vmem:[#allocation8 + $0x2] sm:$0x3] %v426_v22 }
 0x173   :  { %v464_v24 = vpop.f32.mrf.mxu0 }
 0x174   :  { %v465_v25 = vadd.f32 %v497_v23, %v464_v24 }
 0x176   :  { %467 = vst [vmem:[#allocation8] sm:$0x3] %v465_v25 }
 0x177   :  { %480 = dma.vmem_to_hbm [thread:$0]  %s476_s2, 96, %s478_s30, [#allocation4]  }
 0x178   :  { %614 = dma.done.wait [#allocation4], 96  }
 0x179   :  { %615 = vsyncadd [#allocation4], 4294967200 }
 0x17a   :  { %485 = vsyncpa [#allocation3], 1 }
 0x17b   :  { %486 = vsyncpa [#allocation6], 1 }
 0x17c   :  { %487 = vsyncpa [#allocation4], 1 }

</bundles_post_ra>
